<compile_context>
chip_gen: v7x
topology: tpu7x:2x2x1
jax: 0.10.0
libtpu: 0.0.40
codegen_flags: <defaults>
</compile_context>

<pallas_src>
import jax
import jax.numpy as jnp
from jax import lax
from jax.experimental import pallas as pl
from jax.experimental.pallas import tpu as pltpu

LANE = 128
_CHUNK = 256          # lane sub-chunk per inner-loop step: (64, 256) f32 = 16 vregs


def _round_up(a, m):
    return ((a + m - 1) // m) * m


def valuenet_kernel(xt_ref, w1t_ref, b1_ref, w2_ref, b2_ref, out_ref):
    # xt_ref : (IN, TM)   features on sublanes, batch on lanes
    # w1t_ref: (H,  IN)   first-layer weight, transposed
    # b1_ref : (H,  1)
    # w2_ref : (H,  1)
    # b2_ref : (1,  1)    scalar in SMEM
    # out_ref: (1,  TM)   lane-dense value row for this batch tile
    w1t = w1t_ref[...]                       # (H, IN)   loop-invariant
    b1 = b1_ref[...]                         # (H, 1)    loop-invariant
    w2 = w2_ref[...]                         # (H, 1)    loop-invariant
    b2 = b2_ref[0, 0]                        # scalar    loop-invariant

    in_dim = w1t.shape[1]
    tm = out_ref.shape[1]
    assert tm % _CHUNK == 0, "batch tile must be a multiple of the lane chunk"
    n_chunks = tm // _CHUNK

    # Hoist the per-k weight-column slices out of the chunk loop (JAX does not
    # CSE broadcast/slice ops re-issued inside a visible loop).
    w1_cols = [w1t[:, k:k + 1] for k in range(in_dim)]   # each (H, 1)

    def chunk_body(c, carry):
        off = pl.multiple_of(c * _CHUNK, _CHUNK)
        xs = xt_ref[:, pl.ds(off, _CHUNK)]               # (IN, CHUNK)

        # Layer 1: hidden^T = W1^T @ x^T + b1 as IN(=4) broadcast FMAs (VPU).
        h = w1_cols[0] * xs[0:1, :]                      # (H, CHUNK)
        for k in range(1, in_dim):
            h = h + w1_cols[k] * xs[k:k + 1, :]
        h = jnp.maximum(h + b1, 0.0)                     # ReLU, (H, CHUNK)

        # Layer 2: value = sum_h hidden * w2 + b2 (VPU mul + sublane reduce);
        # lane-dense (1, CHUNK) result -> unmasked stores.
        v = jnp.sum(h * w2, axis=0, keepdims=True) + b2
        out_ref[:, pl.ds(off, _CHUNK)] = v.astype(out_ref.dtype)
        return carry

    # Fully-unrolled fixed-trip-count loop: bounds the live hidden tile to one
    # chunk while keeping the schedule visible to the LLO scheduler.
    lax.fori_loop(0, n_chunks, chunk_body, 0, unroll=True)


def value_net_forward(x, w1, b1, w2, b2, *, tile_m=4096, min_pallas_batch=1024):
    """x: (B, 4) f32, w1: (4, H), b1: (H,), w2: (H, 1), b2: (1,) -> (B, 1) f32."""
    B, in_dim = x.shape
    H = w1.shape[1]

    # Small-batch fast path: launch + grid-step overhead would dominate; let
    # XLA fuse the whole (tiny) MLP instead.
    if B < min_pallas_batch:
        return (jnp.maximum(x @ w1 + b1, 0.0) @ w2 + b2).astype(jnp.float32)

    # ---- batch tiling --------------------------------------------------
    # Lane-chunk-aligned padded batch, tile capped at tile_m lanes.
    bp = _round_up(B, _CHUNK)
    tm = min(_round_up(tile_m, _CHUNK), bp)
    # v7x megacore: make sure the "parallel" batch axis has >= 2 grid steps
    # whenever there is enough work to split (no effect on v5e/v6e).
    if bp >= 2 * _CHUNK and bp <= tm:
        tm = _round_up(bp // 2, _CHUNK)
    bp = _round_up(bp, tm)
    grid = (bp // tm,)

    # ---- wrapper-side layout (single fused pad + transpose) -------------
    xt = jnp.pad(x.astype(jnp.float32), ((0, bp - B), (0, 0))).T     # (IN, bp)
    w1t = w1.T.astype(jnp.float32)                                   # (H, IN)
    b1c = b1.reshape(H, 1).astype(jnp.float32)
    w2c = w2.reshape(H, 1).astype(jnp.float32)
    b2c = b2.reshape(1, 1).astype(jnp.float32)

    out = pl.pallas_call(
        valuenet_kernel,
        out_shape=jax.ShapeDtypeStruct((1, bp), jnp.float32),
        grid=grid,
        in_specs=[
            pl.BlockSpec((in_dim, tm), lambda i: (0, i)),        # x tile (pipelined)
            pl.BlockSpec((H, in_dim), lambda i: (0, 0)),         # W1^T (resident)
            pl.BlockSpec((H, 1), lambda i: (0, 0)),              # b1   (resident)
            pl.BlockSpec((H, 1), lambda i: (0, 0)),              # w2   (resident)
            pl.BlockSpec(memory_space=pltpu.MemorySpace.SMEM),   # b2 scalar
        ],
        out_specs=pl.BlockSpec((1, tm), lambda i: (0, i)),       # lane-dense output
        compiler_params=pltpu.CompilerParams(
            dimension_semantics=("parallel",)),                  # megacore on v7x
    )(xt, w1t, b1c, w2c, b2c)

    # Padded tail lanes hold relu(b1)@w2 + b2 garbage; this slice discards it.
    return out[0, :B].reshape(B, 1)


def init_params(key, in_dim=4, hidden_dim=64):
    """Deterministic PyTorch-Linear-style init: U(-1/sqrt(fan_in), 1/sqrt(fan_in))."""
    k1, k2, k3, k4 = jax.random.split(key, 4)
    bound1 = 1.0 / jnp.sqrt(in_dim)
    bound2 = 1.0 / jnp.sqrt(hidden_dim)
    w1 = jax.random.uniform(k1, (in_dim, hidden_dim), jnp.float32, -bound1, bound1)
    b1 = jax.random.uniform(k2, (hidden_dim,), jnp.float32, -bound1, bound1)
    w2 = jax.random.uniform(k3, (hidden_dim, 1), jnp.float32, -bound2, bound2)
    b2 = jax.random.uniform(k4, (1,), jnp.float32, -bound2, bound2)
    return w1, b1, w2, b2


if __name__ == "__main__":
    key = jax.random.PRNGKey(0)
    k_x1, k_x2, k_p = jax.random.split(key, 3)

    in_dim, hidden_dim = 4, 64   # module default hidden_dim=64
    w1, b1, w2, b2 = init_params(k_p, in_dim=in_dim, hidden_dim=hidden_dim)

    def ref_fn(xx):
        return jnp.maximum(xx @ w1 + b1, 0.0) @ w2 + b2

    # 1) Small batch forced through the Pallas kernel (single tile, one chunk).
    x_small = jax.random.normal(k_x1, (8, in_dim), jnp.float32)
    v_small = jax.block_until_ready(
        value_net_forward(x_small, w1, b1, w2, b2, min_pallas_batch=0))
    assert v_small.shape == (8, 1)
    assert jnp.allclose(v_small, ref_fn(x_small), atol=1e-5, rtol=1e-5)

    # 2) Ragged batch exercising >=2 grid steps, multiple in-kernel lane
    #    chunks, and tail padding that must be sliced off.
    x_big = jax.random.normal(k_x2, (600, in_dim), jnp.float32)
    v_big = jax.block_until_ready(
        value_net_forward(x_big, w1, b1, w2, b2, min_pallas_batch=0))
    assert v_big.shape == (600, 1)
    assert jnp.allclose(v_big, ref_fn(x_big), atol=1e-5, rtol=1e-5)

    # 3) Default call on a tiny batch takes the plain-XLA fast path.
    v_fast = jax.block_until_ready(value_net_forward(x_small, w1, b1, w2, b2))
    assert v_fast.shape == (8, 1)
    assert jnp.allclose(v_fast, ref_fn(x_small), atol=1e-5, rtol=1e-5)

    print("KERNEL_OK")
</pallas_src>

<mosaic_0001>
module attributes {stable_mosaic.version = 11 : i64} {
  func.func @valuenet_kernel(%arg0: i32, %arg1: memref<4x256xf32, #tpu.memory_space<vmem>>, %arg2: memref<64x4xf32, #tpu.memory_space<vmem>>, %arg3: memref<64x1xf32, #tpu.memory_space<vmem>>, %arg4: memref<64x1xf32, #tpu.memory_space<vmem>>, %arg5: memref<1x1xf32, #tpu.memory_space<smem>>, %arg6: memref<1x256xf32, #tpu.memory_space<vmem>>) attributes {dimension_semantics = [#tpu.dimension_semantics<parallel>], iteration_bounds = array<i64: 1>, scalar_prefetch = 0 : i64, scratch_operands = 0 : i64, tpu.core_type = #tpu.core_type<tc>, window_params = [{transform_indices = @transform_0, window_bounds = array<i64: 4, 256>}, {pipeline_mode = #tpu.pipeline_mode<synchronous>, transform_indices = @transform_1, window_bounds = array<i64: 64, 4>}, {pipeline_mode = #tpu.pipeline_mode<synchronous>, transform_indices = @transform_2, window_bounds = array<i64: 64, 1>}, {pipeline_mode = #tpu.pipeline_mode<synchronous>, transform_indices = @transform_3, window_bounds = array<i64: 64, 1>}, {transform_indices = @transform_4, window_bounds = array<i64: 1, 1>}, {transform_indices = @transform_5, window_bounds = array<i64: 1, 256>}]} {
    %c0 = arith.constant 0 : index
    %c0_0 = arith.constant 0 : index
    %0 = vector.load %arg2[%c0, %c0_0] : memref<64x4xf32, #tpu.memory_space<vmem>>, vector<64x4xf32>
    %c0_1 = arith.constant 0 : index
    %c0_2 = arith.constant 0 : index
    %1 = vector.load %arg3[%c0_1, %c0_2] : memref<64x1xf32, #tpu.memory_space<vmem>>, vector<64x1xf32>
    %c0_3 = arith.constant 0 : index
    %c0_4 = arith.constant 0 : index
    %2 = vector.load %arg4[%c0_3, %c0_4] : memref<64x1xf32, #tpu.memory_space<vmem>>, vector<64x1xf32>
    %c0_5 = arith.constant 0 : index
    %c0_6 = arith.constant 0 : index
    %3 = memref.load %arg5[%c0_5, %c0_6] : memref<1x1xf32, #tpu.memory_space<smem>>
    %4 = vector.extract_strided_slice %0 {offsets = [0, 0], sizes = [64, 1], strides = [1, 1]} : vector<64x4xf32> to vector<64x1xf32>
    %5 = vector.extract_strided_slice %0 {offsets = [0, 1], sizes = [64, 1], strides = [1, 1]} : vector<64x4xf32> to vector<64x1xf32>
    %6 = vector.extract_strided_slice %0 {offsets = [0, 2], sizes = [64, 1], strides = [1, 1]} : vector<64x4xf32> to vector<64x1xf32>
    %7 = vector.extract_strided_slice %0 {offsets = [0, 3], sizes = [64, 1], strides = [1, 1]} : vector<64x4xf32> to vector<64x1xf32>
    %c0_i32 = arith.constant 0 : i32
    %c256_i32 = arith.constant 256 : i32
    %8 = arith.muli %c0_i32, %c256_i32 : i32
    %9 = tpu.assume_multiple %8, 256 : i32
    %c0_7 = arith.constant 0 : index
    %10 = arith.index_cast %9 : i32 to index
    %11 = vector.load %arg1[%c0_7, %10] : memref<4x256xf32, #tpu.memory_space<vmem>>, vector<4x256xf32>
    %12 = vector.extract_strided_slice %11 {offsets = [0, 0], sizes = [1, 256], strides = [1, 1]} : vector<4x256xf32> to vector<1x256xf32>
    %13 = vector.broadcast %4 : vector<64x1xf32> to vector<64x256xf32>
    %14 = vector.broadcast %12 : vector<1x256xf32> to vector<64x256xf32>
    %15 = arith.mulf %13, %14 : vector<64x256xf32>
    %16 = vector.extract_strided_slice %11 {offsets = [1, 0], sizes = [1, 256], strides = [1, 1]} : vector<4x256xf32> to vector<1x256xf32>
    %17 = vector.broadcast %5 : vector<64x1xf32> to vector<64x256xf32>
    %18 = vector.broadcast %16 : vector<1x256xf32> to vector<64x256xf32>
    %19 = arith.mulf %17, %18 : vector<64x256xf32>
    %20 = arith.addf %15, %19 : vector<64x256xf32>
    %21 = vector.extract_strided_slice %11 {offsets = [2, 0], sizes = [1, 256], strides = [1, 1]} : vector<4x256xf32> to vector<1x256xf32>
    %22 = vector.broadcast %6 : vector<64x1xf32> to vector<64x256xf32>
    %23 = vector.broadcast %21 : vector<1x256xf32> to vector<64x256xf32>
    %24 = arith.mulf %22, %23 : vector<64x256xf32>
    %25 = arith.addf %20, %24 : vector<64x256xf32>
    %26 = vector.extract_strided_slice %11 {offsets = [3, 0], sizes = [1, 256], strides = [1, 1]} : vector<4x256xf32> to vector<1x256xf32>
    %27 = vector.broadcast %7 : vector<64x1xf32> to vector<64x256xf32>
    %28 = vector.broadcast %26 : vector<1x256xf32> to vector<64x256xf32>
    %29 = arith.mulf %27, %28 : vector<64x256xf32>
    %30 = arith.addf %25, %29 : vector<64x256xf32>
    %31 = vector.broadcast %1 : vector<64x1xf32> to vector<64x256xf32>
    %32 = arith.addf %30, %31 : vector<64x256xf32>
    %cst = arith.constant 0.000000e+00 : f32
    %33 = vector.broadcast %cst : f32 to vector<64x256xf32>
    %34 = arith.maximumf %32, %33 : vector<64x256xf32>
    %35 = vector.broadcast %2 : vector<64x1xf32> to vector<64x256xf32>
    %36 = arith.mulf %34, %35 : vector<64x256xf32>
    %cst_8 = arith.constant dense<0.000000e+00> : vector<256xf32>
    %37 = vector.multi_reduction <add>, %36, %cst_8 [0] : vector<64x256xf32> to vector<256xf32>
    %38 = vector.shape_cast %37 : vector<256xf32> to vector<1x256xf32>
    %39 = vector.broadcast %3 : f32 to vector<1x256xf32>
    %40 = arith.addf %38, %39 : vector<1x256xf32>
    %c0_9 = arith.constant 0 : index
    %41 = arith.index_cast %9 : i32 to index
    %42 = vector.load %arg6[%c0_9, %41] : memref<1x256xf32, #tpu.memory_space<vmem>>, vector<1x256xf32>
    tpu.vector_store %arg6[%c0_9, %41], %40 {strides = array<i32>} : memref<1x256xf32, #tpu.memory_space<vmem>>, vector<1x256xf32>,
    %c1_i32 = arith.constant 1 : i32
    return
  }
  func.func @transform_0(%arg0: i32) -> (i32, i32) {
    %c0_i32 = arith.constant 0 : i32
    %c0_i32_0 = arith.constant 0 : i32
    return %c0_i32, %arg0 : i32, i32
  }
  func.func @transform_1(%arg0: i32) -> (i32, i32) {
    %c0_i32 = arith.constant 0 : i32
    %c0_i32_0 = arith.constant 0 : i32
    %c0_i32_1 = arith.constant 0 : i32
    return %c0_i32, %c0_i32_0 : i32, i32
  }
  func.func @transform_2(%arg0: i32) -> (i32, i32) {
    %c0_i32 = arith.constant 0 : i32
    %c0_i32_0 = arith.constant 0 : i32
    %c0_i32_1 = arith.constant 0 : i32
    return %c0_i32, %c0_i32_0 : i32, i32
  }
  func.func @transform_3(%arg0: i32) -> (i32, i32) {
    %c0_i32 = arith.constant 0 : i32
    %c0_i32_0 = arith.constant 0 : i32
    %c0_i32_1 = arith.constant 0 : i32
    return %c0_i32, %c0_i32_0 : i32, i32
  }
  func.func @transform_4(%arg0: i32) -> (i32, i32) {
    %c0_i32 = arith.constant 0 : i32
    %c0_i32_0 = arith.constant 0 : i32
    %c0_i32_1 = arith.constant 0 : i32
    return %c0_i32, %c0_i32_0 : i32, i32
  }
  func.func @transform_5(%arg0: i32) -> (i32, i32) {
    %c0_i32 = arith.constant 0 : i32
    %c0_i32_0 = arith.constant 0 : i32
    return %c0_i32, %arg0 : i32, i32
  }
}

</mosaic_0001>

<bundles_post_ra>
// kernel: tpu_custom_call.1
= control target key start
LH: loop header
LB: loop body
LE: loop exit
PB: predicated region body
PF: predicated region fallthrough
CT: control target
= control target key end

     0   :  { %v608_v2 = vmov 1   ;;  %v609_v3 = vmov 0   ;;  %s943_s0 = inlined_call_operand.vmem [shape: f32[4,256], index: 0, kind: input, shape index: {}]   ;;  %s944_s1 = inlined_call_operand.vmem [shape: f32[64,4], index: 1, kind: input, shape index: {}]   ;;  %s945_s2 = inlined_call_operand.vmem [shape: f32[64,1], index: 2, kind: input, shape index: {}]   ;;  %s946_s3 = inlined_call_operand.vmem [shape: f32[64,1], index: 3, kind: input, shape index: {}]   ;;  %s947_s4 = inlined_call_operand.<no memory space> [shape: f32[1,1], index: 4, kind: input, shape index: {}]   ;;  %s948_s5 = inlined_call_operand.hbm [shape: f32[1,256], index: 5, kind: output, shape index: {}]  }
   0x1   :  { %v24_v0 = vld [vmem:[%s944_s1 + $0x10] sm:$0xff]  ;;  %v22_v1 = vld [vmem:[%s944_s1] sm:$0xff]  ;;  %570 = vset.pattern.permute.xlu0 %v608_v2  ;;  %569 = vset.pattern.permute.xlu1 %v609_v3  ;;  %v25_v4 = vld [vmem:[%s944_s1 + $0x18] sm:$0xff] }
   0x2   :  { %60 = vperm.xlu1 %569, %v24_v0   ;;  %124 = vperm.xlu0 %570, %v22_v1   ;;  %v27_v5 = vld [vmem:[%s944_s1 + $0x28] sm:$0xff] }
   0x6   :  { %65 = vperm.xlu1 %569, %v25_v4   ;;  %136 = vperm.xlu0 %570, %v25_v4  }
   0x7   :  { %11 = vsyncpa [#allocation4], 0  ;;  %v29_v6 = vld [vmem:[%s944_s1 + $0x38] sm:$0xff]  ;;  %v23_v7 = vld [vmem:[%s944_s1 + $0x8] sm:$0xff]  ;;  %v610_v8 = vmov 2   ;;  %v611_v10 = vmov 3   ;;  %v949_v30 = vlaneseq }
   0x8   :  { %v26_v9 = vld [vmem:[%s944_s1 + $0x20] sm:$0xff]  ;;  %v28_v11 = vld [vmem:[%s944_s1 + $0x30] sm:$0xff]  ;;  %v31_v12 = vld [vmem:[%s945_s2 + $0x8] sm:$0xff]  ;;  %s613_s15 = smov [#allocation3]  }
   0x9   :  { %v30_v13 = vld [vmem:[%s945_s2] sm:$0xff]  ;;  %v32_v15 = vld [vmem:[%s945_s2 + $0x10] sm:$0xff]  ;;  %v41_v16 = vld [vmem:[%s946_s3 + $0x18] sm:$0xff]  ;;  %v729_v33 = vshrl.u32 %v949_v30, 7  ;;  %s555_s16 = sshll.u32 %s613_s15, 4  ;;  %s556_s16 = int_to_ptr.vmem [resolvable:$true] %s555_s16 }
   0xa   :  { %75 = vperm.xlu1 %569, %v27_v5   ;;  %144 = vperm.xlu0 %570, %v27_v5   ;;  %v38_v14 = vld [vmem:[%s946_s3] sm:$0xff]  ;;  %v37_v17 = vld [vmem:[%s945_s2 + $0x38] sm:$0xff]  ;;  %v44_v18 = vld [vmem:[%s946_s3 + $0x30] sm:$0xff]  ;;  %s584_s17 = scalar_lea.vmem %s556_s16, 32  ;;  %p589_p1 = scmp.lt.s32.totalorder %s556_s16, %s556_s16 }
   0xb   :  { %v33_v19 = vld [vmem:[%s945_s2 + $0x18] sm:$0xff]  ;;  %v39_v20 = vld [vmem:[%s946_s3 + $0x8] sm:$0xff]  ;;  %v34_v21 = vld [vmem:[%s945_s2 + $0x20] sm:$0xff]  ;;  %951 = vst [vmem:[#allocation6_spill] sm:$0xff] %v729_v33  ;;  %v91_v36 = vsub.s32 0, %v729_v33  ;;  %v95_v37 = vsub.s32 4, %v729_v33  ;;  %p585_p0 = scmp.ne.s32.totalorder %s556_s16, %s584_s17  ;;  %p590_p2 = scmp.lt.s32.totalorder %s584_s17, %s584_s17 }
   0xc   :  { %v40_v22 = vld [vmem:[%s946_s3 + $0x10] sm:$0xff]  ;;  %v35_v23 = vld [vmem:[%s945_s2 + $0x28] sm:$0xff]  ;;  %v42_v25 = vld [vmem:[%s946_s3 + $0x20] sm:$0xff]  ;;  %v157_v39 = vsub.s32 1, %v729_v33  ;;  %v161_v40 = vsub.s32 5, %v729_v33 }
   0xd   :  { %v36_v24 = vld [vmem:[%s945_s2 + $0x30] sm:$0xff]  ;;  %v43_v26 = vld [vmem:[%s946_s3 + $0x28] sm:$0xff]  ;;  %v45_v27 = vld [vmem:[%s946_s3 + $0x38] sm:$0xff]  ;;  %p591_p3 = por %p590_p2, %p589_p1 }
   0xe   :  { %85 = vperm.xlu1 %569, %v29_v6   ;;  %152 = vperm.xlu0 %570, %v29_v6   ;;  %v47_v38 = vld [vmem:[%s943_s0] sm:$0xff] }
   0xf   :  { %v92_v42 = vrot.slane %v47_v38, %v91_v36  ;;  %v96_v43 = vrot.slane %v47_v38, %v95_v37  ;;  %v158_v45 = vrot.slane %v47_v38, %v157_v39  ;;  %v162_v46 = vrot.slane %v47_v38, %v161_v40  ;;  %p592_p4 = pnand %p591_p3, %p585_p0 }
  0x11   :  { %v746_v48 = vrot.slane %v92_v42, %v91_v36  ;;  %v748_v49 = vrot.slane %v96_v43, %v91_v36  ;;  %v750_v51 = vrot.slane %v158_v45, %v157_v39  ;;  %v752_v52 = vrot.slane %v162_v46, %v157_v39 }
  0x12   :  { %571 = vset.pattern.permute.xlu1 %v608_v2  ;;  %573 = vset.pattern.permute.xlu0 %v610_v8 }
  0x13   :  { %128 = vperm.xlu1 %571, %v23_v7   ;;  %210 = vperm.xlu0 %573, %v23_v7  }
  0x17   :  { %132 = vperm.xlu1 %571, %v24_v0   ;;  %222 = vperm.xlu0 %573, %v26_v9  }
  0x1b   :  { %140 = vperm.xlu1 %571, %v26_v9   ;;  %575 = vset.pattern.permute.xlu0 %v611_v10 }
  0x1c   :  { %292 = vperm.xlu0 %575, %v23_v7  }
  0x1f   :  { %148 = vperm.xlu1 %571, %v28_v11  }
  0x20   :  { %304 = vperm.xlu0 %575, %v26_v9  }
  0x23   :  { %572 = vset.pattern.permute.xlu1 %v610_v8 }
  0x24   :  { %206 = vperm.xlu1 %572, %v22_v1   ;;  %308 = vperm.xlu0 %575, %v27_v5  }
  0x28   :  { %214 = vperm.xlu1 %572, %v24_v0   ;;  %312 = vperm.xlu0 %575, %v28_v11  }
  0x2c   :  { %218 = vperm.xlu1 %572, %v25_v4   ;;  %316 = vperm.xlu0 %575, %v29_v6  }
  0x30   :  { %574 = vset.pattern.permute.xlu1 %v611_v10  ;;  %583 = vset.pattern.permute.xlu0 %v609_v3 }
  0x31   :  { %288 = vperm.xlu1 %574, %v22_v1   ;;  %50 = vperm.xlu0 %583, %v22_v1  }
  0x35   :  { %296 = vperm.xlu1 %574, %v24_v0   ;;  %55 = vperm.xlu0 %583, %v23_v7  }
  0x39   :  { %300 = vperm.xlu1 %574, %v25_v4   ;;  %70 = vperm.xlu0 %583, %v26_v9  }
  0x3d   :  { %576 = vset.pattern.permute.xlu1 %v609_v3  ;;  %80 = vperm.xlu0 %583, %v28_v11  }
  0x3e   :  { %376 = vperm.xlu1 %576, %v31_v12   ;;  %v239_v12 = vsub.s32 2, %v729_v33 }
  0x41   :  { %371 = vperm.xlu0 %583, %v30_v13   ;;  %v243_v13 = vsub.s32 6, %v729_v33 }
  0x42   :  { %577 = vset.pattern.permute.xlu1 %v610_v8 }
  0x43   :  { %226 = vperm.xlu1 %577, %v27_v5  }
  0x45   :  { %443 = vperm.xlu0 %583, %v38_v14   ;;  %v321_v14 = vsub.s32 3, %v729_v33 }
  0x47   :  { %578 = vset.pattern.permute.xlu1 %v609_v3 }
  0x48   :  { %381 = vperm.xlu1 %578, %v32_v15   ;;  %v325_v15 = vsub.s32 7, %v729_v33 }
  0x49   :  { %458 = vperm.xlu0 %583, %v41_v16  }
  0x4c   :  { %579 = vset.pattern.permute.xlu1 %v610_v8 }
  0x4d   :  { %230 = vperm.xlu1 %579, %v28_v11   ;;  %406 = vperm.xlu0 %583, %v37_v17  }
  0x51   :  { %580 = vset.pattern.permute.xlu1 %v609_v3  ;;  %473 = vperm.xlu0 %583, %v44_v18   ;;  %v240_v18 = vrot.slane %v47_v38, %v239_v12 }
  0x52   :  { %386 = vperm.xlu1 %580, %v33_v19   ;;  %v244_v19 = vrot.slane %v47_v38, %v243_v13 }
  0x56   :  { %448 = vperm.xlu1 %580, %v39_v20   ;;  %v322_v20 = vrot.slane %v47_v38, %v321_v14 }
  0x58   :  { %v804_v36 = vrot.slane %v322_v20, %v321_v14 }
  0x5a   :  { %581 = vset.pattern.permute.xlu1 %v610_v8 }
  0x5b   :  { %234 = vperm.xlu1 %581, %v29_v6  }
  0x5f   :  { %582 = vset.pattern.permute.xlu1 %v609_v3 }
  0x60   :  { %391 = vperm.xlu1 %582, %v34_v21   ;;  %v326_v21 = vrot.slane %v47_v38, %v325_v15 }
  0x62   :  { %v806_v37 = vrot.slane %v326_v21, %v321_v14 }
  0x64   :  { %453 = vperm.xlu1 %582, %v40_v22  }
  0x68   :  { %396 = vperm.xlu1 %582, %v35_v23   ;;  %v794_v23 = vrot.slane %v240_v18, %v239_v12 }
  0x6c   :  { %401 = vperm.xlu1 %582, %v36_v24   ;;  %v796_v24 = vrot.slane %v244_v19, %v239_v12 }
  0x70   :  { %463 = vperm.xlu1 %582, %v42_v25  }
  0x74   :  { %468 = vperm.xlu1 %582, %v43_v26  }
  0x78   :  { %478 = vperm.xlu1 %582, %v45_v27  }
  0x81   :  { %v61_v28 = vpop.permute.xlu1 %60  ;;  %v722_v29 = vpop.permute.xlu0 %124 }
  0x82   :  { %v111_v54 = vmul.f32 %v746_v48, %v61_v28  ;;  %v112_v55 = vmul.f32 %v748_v49, %v61_v28  ;;  %v173_v27 = vmul.f32 %v750_v51, %v722_v29  ;;  %v174_v28 = vmul.f32 %v752_v52, %v722_v29 }
  0x85   :  { %v724_v31 = vpop.permute.xlu1 %65  ;;  %v726_v32 = vpop.permute.xlu0 %136 }
  0x86   :  { %v113_v45 = vmul.f32 %v746_v48, %v724_v31  ;;  %v114_v46 = vmul.f32 %v748_v49, %v724_v31  ;;  %v179_v29 = vmul.f32 %v750_v51, %v726_v32 }
  0x89   :  { %v731_v34 = vpop.permute.xlu1 %75  ;;  %v733_v35 = vpop.permute.xlu0 %144 }
  0x8a   :  { %v118_v31 = vmul.f32 %v748_v49, %v731_v34  ;;  %v183_v12 = vmul.f32 %v750_v51, %v733_v35 }
  0x8d   :  { %v742_v41 = vpop.permute.xlu1 %85  ;;  %v744_v44 = vpop.permute.xlu0 %152 }
  0x8e   :  { %v121_v13 = vmul.f32 %v746_v48, %v742_v41 }
  0x92   :  { %v129_v47 = vpop.permute.xlu1 %128  ;;  %v211_v50 = vpop.permute.xlu0 %210 }
  0x93   :  { %v175_v39 = vmul.f32 %v750_v51, %v129_v47  ;;  %v176_v40 = vmul.f32 %v752_v52, %v129_v47  ;;  %v257_v47 = vmul.f32 %v794_v23, %v211_v50 }
  0x96   :  { %v133_v53 = vpop.permute.xlu1 %132  ;;  %v762_v60 = vpop.permute.xlu0 %222 }
  0x97   :  { %v177_v56 = vmul.f32 %v750_v51, %v133_v53  ;;  %v178_v57 = vmul.f32 %v752_v52, %v133_v53  ;;  %v180_v53 = vmul.f32 %v752_v52, %v726_v32  ;;  %v184_v32 = vmul.f32 %v752_v52, %v733_v35 }
  0x99   :  { %v758_v58 = vadd.f32 %v177_v56, %v111_v54  ;;  %v760_v59 = vadd.f32 %v178_v57, %v112_v55  ;;  %v258_v55 = vmul.f32 %v796_v24, %v211_v50  ;;  %v122_v50 = vmul.f32 %v748_v49, %v742_v41 }
  0x9a   :  { %v764_v61 = vpop.permute.xlu1 %140 }
  0x9b   :  { %v293_v63 = vpop.permute.xlu0 %292 }
  0x9c   :  { %v339_v18 = vmul.f32 %v804_v36, %v293_v63  ;;  %v340_v19 = vmul.f32 %v806_v37, %v293_v63  ;;  %v850_v63 = vadd.f32 %v184_v32, %v118_v31 }
  0x9e   :  { %v766_v62 = vpop.permute.xlu1 %148 }
  0x9f   :  { %v768_v1 = vpop.permute.xlu0 %304 }
  0xa3   :  { %v207_v0 = vpop.permute.xlu1 %206  ;;  %v772_v4 = vpop.permute.xlu0 %308 }
  0xa4   :  { %v255_v35 = vmul.f32 %v794_v23, %v207_v0  ;;  %v256_v21 = vmul.f32 %v796_v24, %v207_v0 }
  0xa7   :  { %v215_v2 = vpop.permute.xlu1 %214  ;;  %v776_v6 = vpop.permute.xlu0 %312 }
  0xab   :  { %v770_v3 = vpop.permute.xlu1 %218  ;;  %v780_v8 = vpop.permute.xlu0 %316 }
  0xb0   :  { %v774_v5 = vpop.permute.xlu1 %288  ;;  %v51_v11 = vpop.permute.xlu0 %50 }
  0xb1   :  { %v107_v42 = vmul.f32 %v746_v48, %v51_v11  ;;  %v108_v43 = vmul.f32 %v748_v49, %v51_v11  ;;  %v117_v11 = vmul.f32 %v746_v48, %v731_v34  ;;  %v188_v34 = vmul.f32 %v752_v52, %v744_v44 }
  0xb2   :  { %v337_v0 = vmul.f32 %v804_v36, %v774_v5 }
  0xb3   :  { %v189_v14 = vadd.f32 %v173_v27, %v107_v42  ;;  %v190_v15 = vadd.f32 %v174_v28, %v108_v43  ;;  %v259_v27 = vmul.f32 %v794_v23, %v215_v2  ;;  %v260_v28 = vmul.f32 %v796_v24, %v215_v2 }
  0xb4   :  { %v778_v7 = vpop.permute.xlu1 %296  ;;  %v56_v17 = vpop.permute.xlu0 %55  ;;  %v848_v43 = vadd.f32 %v183_v12, %v117_v11  ;;  %v854_v33 = vadd.f32 %v188_v34, %v122_v50 }
  0xb5   :  { %v109_v25 = vmul.f32 %v746_v48, %v56_v17  ;;  %v110_v26 = vmul.f32 %v748_v49, %v56_v17  ;;  %v187_v17 = vmul.f32 %v750_v51, %v744_v44  ;;  %v271_v44 = vadd.f32 %v255_v35, %v189_v14 }
  0xb6   :  { %v272_v42 = vadd.f32 %v256_v21, %v190_v15  ;;  %v341_v11 = vmul.f32 %v804_v36, %v778_v7 }
  0xb7   :  { %v191_v56 = vadd.f32 %v175_v39, %v109_v25  ;;  %v192_v57 = vadd.f32 %v176_v40, %v110_v26  ;;  %v195_v39 = vadd.f32 %v179_v29, %v113_v45  ;;  %v196_v40 = vadd.f32 %v180_v53, %v114_v46 }
  0xb8   :  { %v782_v9 = vpop.permute.xlu1 %300  ;;  %v71_v38 = vpop.permute.xlu0 %70  ;;  %v852_v30 = vadd.f32 %v187_v17, %v121_v13  ;;  %v275_v46 = vadd.f32 %v259_v27, %v758_v58  ;;  %v276_v29 = vadd.f32 %v260_v28, %v760_v59  ;;  %v261_v53 = vmul.f32 %v794_v23, %v770_v3 }
  0xb9   :  { %v273_v25 = vadd.f32 %v257_v47, %v191_v56  ;;  %v274_v41 = vadd.f32 %v258_v55, %v192_v57  ;;  %v338_v47 = vmul.f32 %v806_v37, %v774_v5  ;;  %v262_v56 = vmul.f32 %v796_v24, %v770_v3 }
  0xba   :  { %v342_v5 = vmul.f32 %v806_v37, %v778_v7  ;;  %v353_v31 = vadd.f32 %v337_v0, %v271_v44  ;;  %v343_v58 = vmul.f32 %v804_v36, %v782_v9  ;;  %v344_v59 = vmul.f32 %v806_v37, %v782_v9 }
  0xbb   :  { %v355_v55 = vadd.f32 %v339_v18, %v273_v25  ;;  %v356_v2 = vadd.f32 %v340_v19, %v274_v41  ;;  %v354_v12 = vadd.f32 %v338_v47, %v272_v42  ;;  %v115_v32 = vmul.f32 %v746_v48, %v71_v38 }
  0xbc   :  { %v842_v20 = vpop.permute.xlu0 %80  ;;  %v116_v13 = vmul.f32 %v748_v49, %v71_v38  ;;  %v181_v7 = vmul.f32 %v750_v51, %v764_v61  ;;  %v182_v17 = vmul.f32 %v752_v52, %v764_v61  ;;  %v277_v34 = vadd.f32 %v261_v53, %v195_v39 }
  0xbd   :  { %v784_v10 = vpop.permute.xlu1 %376  ;;  %v278_v18 = vadd.f32 %v262_v56, %v196_v40  ;;  %v263_v9 = vmul.f32 %v794_v23, %v762_v60  ;;  %v264_v38 = vmul.f32 %v796_v24, %v762_v60  ;;  %v357_v35 = vadd.f32 %v341_v11, %v275_v46 }
  0xbe   :  { %v411_v3 = vadd.f32 %v784_v10, %v355_v55  ;;  %v412_v50 = vadd.f32 %v784_v10, %v356_v2  ;;  %v358_v21 = vadd.f32 %v342_v5, %v276_v29  ;;  %v197_v10 = vadd.f32 %v181_v7, %v115_v32 }
  0xbf   :  { %v198_v25 = vadd.f32 %v182_v17, %v116_v13  ;;  %v359_v41 = vadd.f32 %v343_v58, %v277_v34  ;;  %v360_v27 = vadd.f32 %v344_v59, %v278_v18  ;;  %v185_v60 = vmul.f32 %v750_v51, %v766_v62 }
  0xc0   :  { %v372_v57 = vpop.permute.xlu0 %371  ;;  %v427_v28 = vmax.f32 %v411_v3, 0.0  ;;  %v428_v44 = vmax.f32 %v412_v50, 0.0  ;;  %v186_v2 = vmul.f32 %v752_v52, %v766_v62  ;;  %v345_v46 = vmul.f32 %v804_v36, %v768_v1 }
  0xc1   :  { %v409_v14 = vadd.f32 %v372_v57, %v353_v31  ;;  %v410_v15 = vadd.f32 %v372_v57, %v354_v12  ;;  %v346_v29 = vmul.f32 %v806_v37, %v768_v1  ;;  %v119_v56 = vmul.f32 %v746_v48, %v842_v20 }
  0xc2   :  { %v790_v16 = vpop.permute.xlu1 %226  ;;  %v279_v5 = vadd.f32 %v263_v9, %v197_v10  ;;  %v280_v31 = vadd.f32 %v264_v38, %v198_v25 }
  0xc3   :  { %v425_v42 = vmax.f32 %v409_v14, 0.0  ;;  %v426_v0 = vmax.f32 %v410_v15, 0.0  ;;  %v265_v1 = vmul.f32 %v794_v23, %v790_v16  ;;  %v266_v59 = vmul.f32 %v796_v24, %v790_v16 }
  0xc4   :  { %v444_v61 = vpop.permute.xlu0 %443  ;;  %v201_v50 = vadd.f32 %v185_v60, %v119_v56 }
  0xc5   :  { %v481_v11 = vmul.f32 %v444_v61, %v425_v42  ;;  %v482_v51 = vmul.f32 %v444_v61, %v426_v0  ;;  %v281_v38 = vadd.f32 %v265_v1, %v848_v43  ;;  %v349_v43 = vmul.f32 %v804_v36, %v776_v6 }
  0xc6   :  { %v351_v61 = vmul.f32 %v804_v36, %v780_v8 }
  0xc7   :  { %v792_v22 = vpop.permute.xlu1 %381 }
  0xc8   :  { %v413_v39 = vadd.f32 %v792_v22, %v357_v35  ;;  %v414_v40 = vadd.f32 %v792_v22, %v358_v21  ;;  %v120_v22 = vmul.f32 %v748_v49, %v842_v20  ;;  %v459_v15 = vpop.permute.xlu0 %458  ;;  %v361_v35 = vadd.f32 %v345_v46, %v279_v5 }
  0xc9   :  { %v362_v21 = vadd.f32 %v346_v29, %v280_v31 }
  0xca   :  { %v429_v52 = vmax.f32 %v413_v39, 0.0  ;;  %v430_v62 = vmax.f32 %v414_v40, 0.0  ;;  %v202_v14 = vadd.f32 %v186_v2, %v120_v22  ;;  %v352_v39 = vmul.f32 %v806_v37, %v780_v8 }
  0xcc   :  { %v820_v54 = vpop.permute.xlu1 %230 }
  0xcd   :  { %v267_v48 = vmul.f32 %v794_v23, %v820_v54  ;;  %v268_v49 = vmul.f32 %v796_v24, %v820_v54  ;;  %v282_v54 = vadd.f32 %v266_v59, %v850_v63  ;;  %v350_v63 = vmul.f32 %v806_v37, %v776_v6 }
  0xcf   :  { %v283_v25 = vadd.f32 %v267_v48, %v201_v50 }
  0xd1   :  { %v387_v26 = vpop.permute.xlu1 %386 }
  0xd2   :  { %v415_v47 = vadd.f32 %v387_v26, %v359_v41  ;;  %v416_v55 = vadd.f32 %v387_v26, %v360_v27  ;;  %v284_v41 = vadd.f32 %v268_v49, %v202_v14 }
  0xd4   :  { %v431_v12 = vmax.f32 %v415_v47, 0.0  ;;  %v432_v58 = vmax.f32 %v416_v55, 0.0  ;;  %v366_v55 = vadd.f32 %v350_v63, %v284_v41 }
  0xd5   :  { %v449_v45 = vpop.permute.xlu1 %448 }
  0xd6   :  { %v483_v26 = vmul.f32 %v449_v45, %v427_v28  ;;  %v484_v57 = vmul.f32 %v449_v45, %v428_v44  ;;  %v487_v34 = vmul.f32 %v459_v15, %v431_v12  ;;  %v488_v16 = vmul.f32 %v459_v15, %v432_v58 }
  0xd8   :  { %v497_v45 = vadd.f32 %v483_v26, %v481_v11  ;;  %v510_v32 = vadd.f32 %v484_v57, %v482_v51 }
  0xda   :  { %v235_v19 = vpop.permute.xlu1 %234 }
  0xdb   :  { %v269_v7 = vmul.f32 %v794_v23, %v235_v19  ;;  %v270_v17 = vmul.f32 %v796_v24, %v235_v19  ;;  %v347_v23 = vmul.f32 %v804_v36, %v772_v4  ;;  %v348_v24 = vmul.f32 %v806_v37, %v772_v4 }
  0xdd   :  { %v285_v19 = vadd.f32 %v269_v7, %v852_v30  ;;  %v286_v44 = vadd.f32 %v270_v17, %v854_v33  ;;  %v363_v40 = vadd.f32 %v347_v23, %v281_v38  ;;  %v364_v4 = vadd.f32 %v348_v24, %v282_v54 }
  0xde   :  { %v365_v30 = vadd.f32 %v349_v43, %v283_v25  ;;  %v523_v24 = vstv %s947_s4 }
  0xdf   :  { %v392_v53 = vpop.permute.xlu1 %391  ;;  %v367_v2 = vadd.f32 %v351_v61, %v285_v19  ;;  %v368_v46 = vadd.f32 %v352_v39, %v286_v44 }
  0xe0   :  { %v417_v42 = vadd.f32 %v392_v53, %v361_v35  ;;  %v418_v0 = vadd.f32 %v392_v53, %v362_v21  ;;  %v407_v53 = vpop.permute.xlu0 %406  ;;  %v612_v21 = vmov 1966171168  }
  0xe1   :  { %v423_v8 = vadd.f32 %v407_v53, %v367_v2  ;;  %v424_v37 = vadd.f32 %v407_v53, %v368_v46 }
  0xe2   :  { %v433_v29 = vmax.f32 %v417_v42, 0.0  ;;  %v434_v56 = vmax.f32 %v418_v0, 0.0  ;;  %v952_v42 = vld [vmem:[#allocation6_spill] sm:$0xff] }
  0xe3   :  { %v454_v20 = vpop.permute.xlu1 %453  ;;  %v439_v48 = vmax.f32 %v423_v8, 0.0  ;;  %v440_v49 = vmax.f32 %v424_v37, 0.0 }
  0xe4   :  { %v485_v13 = vmul.f32 %v454_v20, %v429_v52  ;;  %v486_v3 = vmul.f32 %v454_v20, %v430_v62  ;;  %v474_v59 = vpop.permute.xlu0 %473 }
  0xe6   :  { %v498_v18 = vadd.f32 %v497_v45, %v485_v13  ;;  %v511_v9 = vadd.f32 %v510_v32, %v486_v3 }
  0xe7   :  { %v397_v10 = vpop.permute.xlu1 %396 }
  0xe8   :  { %v499_v27 = vadd.f32 %v498_v18, %v487_v34  ;;  %v512_v28 = vadd.f32 %v511_v9, %v488_v16  ;;  %v419_v33 = vadd.f32 %v397_v10, %v363_v40  ;;  %v420_v60 = vadd.f32 %v397_v10, %v364_v4 }
  0xe9   :  { %v530_v10 = vunpack.c.l.s4 %v612_v21  ;;  %v953_v40 = vlaneseq }
  0xea   :  { %v435_v11 = vmax.f32 %v419_v33, 0.0  ;;  %v436_v51 = vmax.f32 %v420_v60, 0.0 }
  0xeb   :  { %v402_v47 = vpop.permute.xlu1 %401  ;;  %v531_v23 = vunpack.c.0.s8 %v530_v10  ;;  %vm546_vm0 = vcmp.lt.s32.totalorder %v953_v40, 256 }
  0xec   :  { %v421_v6 = vadd.f32 %v402_v47, %v365_v30  ;;  %v422_v22 = vadd.f32 %v402_v47, %v366_v55 }
  0xed   :  { %v534_v0 = vsub.s32 %v531_v23, %v952_v42 }
  0xee   :  { %v437_v5 = vmax.f32 %v421_v6, 0.0  ;;  %v438_v31 = vmax.f32 %v422_v22, 0.0 }
  0xef   :  { %v464_v26 = vpop.permute.xlu1 %463 }
  0xf0   :  { %v489_v57 = vmul.f32 %v464_v26, %v433_v29  ;;  %v490_v36 = vmul.f32 %v464_v26, %v434_v56  ;;  %v493_v20 = vmul.f32 %v474_v59, %v437_v5  ;;  %v494_v45 = vmul.f32 %v474_v59, %v438_v31 }
  0xf2   :  { %v500_v52 = vadd.f32 %v499_v27, %v489_v57  ;;  %v513_v62 = vadd.f32 %v512_v28, %v490_v36 }
  0xf3   :  { %v469_v12 = vpop.permute.xlu1 %468 }
  0xf4   :  { %v491_v58 = vmul.f32 %v469_v12, %v435_v11  ;;  %v492_v1 = vmul.f32 %v469_v12, %v436_v51 }
  0xf6   :  { %v501_v32 = vadd.f32 %v500_v52, %v491_v58  ;;  %v514_v13 = vadd.f32 %v513_v62, %v492_v1 }
  0xf7   :  { %v479_v3 = vpop.permute.xlu1 %478 }
  0xf8   :  { %v495_v50 = vmul.f32 %v479_v3, %v439_v48  ;;  %v496_v14 = vmul.f32 %v479_v3, %v440_v49  ;;  %v502_v15 = vadd.f32 %v501_v32, %v493_v20  ;;  %v515_v7 = vadd.f32 %v514_v13, %v494_v45 }
  0xfa   :  { %v503_v17 = vadd.f32 %v502_v15, %v495_v50  ;;  %v516_v34 = vadd.f32 %v515_v7, %v496_v14 }
  0xfc   :  { %v504_v16 = vrot.slane %v503_v17, 4  ;;  %v517_v18 = vrot.slane %v516_v34, 4 }
  0xfe   :  { %v505_v9 = vadd.f32 %v504_v16, %v503_v17  ;;  %v518_v38 = vadd.f32 %v517_v18, %v516_v34 }
 0x100   :  { %v506_v54 = vrot.slane %v505_v9, 2  ;;  %v519_v35 = vrot.slane %v518_v38, 2 }
 0x102   :  { %v507_v25 = vadd.f32 %v506_v54, %v505_v9  ;;  %v520_v41 = vadd.f32 %v519_v35, %v518_v38 }
 0x104   :  { %v508_v27 = vrot.slane %v507_v25, 1  ;;  %v521_v28 = vrot.slane %v520_v41, 1 }
 0x106   :  { %v509_v19 = vadd.f32 %v508_v27, %v507_v25  ;;  %v522_v44 = vadd.f32 %v521_v28, %v520_v41 }
 0x108   :  { %v524_v43 = vadd.f32 %v523_v24, %v509_v19  ;;  %v525_v63 = vadd.f32 %v523_v24, %v522_v44 }
 0x10a   :  { %v528_v61 = vcombine.low %v524_v43, %v525_v63 }
 0x10c   :  { %v535_v39 = vrot.slane %v528_v61, %v534_v0 }
 0x10e   :  { %v542_v4 = vrot.slane %v535_v39, %v534_v0 }
 0x110   :  { %548 = vst.msk [vmem:[#allocation3] sm:$0x3] %vm546_vm0, %v542_v4 }
 0x111   :  { %595 = shalt.err (!%p592_p4)
}
 0x112   :  { %s596_s19 = scalar_lea.hbm %s948_s5, 32 }
 0x113   :  { %p597_p5 = scmp.ne.s32.totalorder %s948_s5, %s596_s19  ;;  %p600_p6 = scmp.lt.u32.totalorder %s596_s19, %s948_s5 }
 0x115   :  { %p602_p7 = pnand %p600_p6, %p597_p5 }
 0x117   :  { %605 = shalt.err (!%p602_p7)
}
 0x118   :  { %558 = dma.vmem_to_hbm [thread:$0]  %s556_s16, 32, %s948_s5, [#allocation4]  }
 0x119   :  { %606 = dma.done.wait [#allocation4], 32  }
 0x11a   :  { %607 = vsyncadd [#allocation4], 4294967264 }
 0x11b   :  { %562 = vsyncpa [#allocation4], 1 }

</bundles_post_ra>
